<compile_context>
chip_gen: v6e
topology: v6e:2x2x1
jax: 0.10.0
libtpu: 0.0.40
codegen_flags: <defaults>
</compile_context>

<pallas_src>
import math

import jax
import jax.numpy as jnp
from jax.experimental import pallas as pl
from jax.experimental.pallas import tpu as pltpu

NUM_CLASSES = 10          # stands in for args.num_classes
C_H, C_L = 64, 64         # h / l channel counts; sum = 128 (conv1 in_channels)
C_IN = C_H + C_L          # 128
C_MID = 512               # conv1 out_channels
H = W = 5                 # avg_pool2d(kernel_size=5) -> 1x1
PIX = H * W               # 25 pixels per batch element
K_H = C_H * PIX           # 1600  (flattened h row length)
K_L = C_L * PIX           # 1600  (flattened l row length)
NC_PAD = 128              # lane-padded class dimension (multiple of 128)


def _round_up(x, m):
    return (x + m - 1) // m * m


def classify_kernel(h_ref, l_ref, wh_ref, wl_ref, b_ref, out_ref):
    # h_ref:   (tile_n, 1600) f32   raw h, flattened NCHW rows
    # l_ref:   (tile_n, 1600) f32   raw l, flattened NCHW rows
    # wh_ref:  (1600, 128)    bf16  folded (pool * conv1 * linear1) weight, h part
    # wl_ref:  (1600, 128)    bf16  folded weight, l part
    # b_ref:   (1, 128)       f32   folded bias
    # out_ref: (tile_n, 128)  f32
    hh = h_ref[...].astype(wh_ref.dtype)
    ll = l_ref[...].astype(wl_ref.dtype)
    acc = jnp.dot(hh, wh_ref[...], preferred_element_type=jnp.float32)
    acc = acc + jnp.dot(ll, wl_ref[...], preferred_element_type=jnp.float32)
    out_ref[...] = (acc + b_ref[...]).astype(out_ref.dtype)


def classify_forward(h, l, h_p, l_p, params, *, tile_n=512,
                     compute_dtype=jnp.bfloat16):
    """h, l: NCHW float32 (N, 64, 5, 5); h_p, l_p unused (as in the reference)."""
    del h_p, l_p
    w1, b1, w2, b2 = params
    n = h.shape[0]

    # --- fold conv1 + avg_pool + linear1 into one weight/bias (all in f32) ---
    w2p = jnp.pad(w2, ((0, 0), (0, NC_PAD - NUM_CLASSES)))          # (512, 128)
    b2p = jnp.pad(b2, ((0, 0), (0, NC_PAD - NUM_CLASSES)))          # (1, 128)
    w_eff = jnp.dot(w1, w2p) * (1.0 / PIX)                          # (128, 128) f32
    b_eff = (jnp.dot(b1, w2p) + b2p).astype(jnp.float32)            # (1, 128)
    # row c*25 + p of w_big corresponds to channel c, pixel p of the NCHW input
    w_big = jnp.repeat(w_eff, PIX, axis=0)                          # (3200, 128)
    w_big_h = w_big[:K_H].astype(compute_dtype)                     # (1600, 128) bf16
    w_big_l = w_big[K_H:].astype(compute_dtype)                     # (1600, 128) bf16

    # --- flatten the NCHW inputs (free, contiguous reshape); keep f32 --------
    h_flat = h.reshape(n, K_H)
    l_flat = l.reshape(n, K_L)

    # --- batch tiling: >= 8 sublanes, and keep >= 2 grid steps for megacore --
    n_pad8 = _round_up(n, 8)
    half = _round_up((n_pad8 + 1) // 2, 8)
    tile_n = _round_up(max(8, min(tile_n, half)), 8)
    n_pad = _round_up(n, tile_n)
    if n_pad != n:
        h_flat = jnp.pad(h_flat, ((0, n_pad - n), (0, 0)))
        l_flat = jnp.pad(l_flat, ((0, n_pad - n), (0, 0)))

    # --- VMEM budget (double-buffered f32 input tiles dominate) --------------
    vmem_bytes = (2 * 2 * tile_n * K_H * 4        # two input tiles, double-buffered
                  + 2 * 2 * K_H * NC_PAD * 2      # resident bf16 weights
                  + 2 * tile_n * NC_PAD * 4       # output tile
                  + (2 << 20))                    # slack
    vmem_limit = max(32 << 20, min(vmem_bytes, 96 << 20))

    grid = (n_pad // tile_n,)
    out = pl.pallas_call(
        classify_kernel,
        out_shape=jax.ShapeDtypeStruct((n_pad, NC_PAD), jnp.float32),
        grid_spec=pltpu.PrefetchScalarGridSpec(
            num_scalar_prefetch=0,
            grid=grid,
            in_specs=[
                pl.BlockSpec((tile_n, K_H), lambda i: (i, 0)),    # h tile (pipelined)
                pl.BlockSpec((tile_n, K_L), lambda i: (i, 0)),    # l tile (pipelined)
                pl.BlockSpec((K_H, NC_PAD), lambda i: (0, 0)),    # folded weight (h)
                pl.BlockSpec((K_L, NC_PAD), lambda i: (0, 0)),    # folded weight (l)
                pl.BlockSpec((1, NC_PAD), lambda i: (0, 0)),      # folded bias
            ],
            out_specs=pl.BlockSpec((tile_n, NC_PAD), lambda i: (i, 0)),
        ),
        compiler_params=pltpu.CompilerParams(
            dimension_semantics=("parallel",),
            vmem_limit_bytes=vmem_limit),
    )(h_flat, l_flat, w_big_h, w_big_l, b_eff)

    # drop batch / class padding; .squeeze(-1).squeeze(-1) is a no-op for NUM_CLASSES > 1
    return out[:n, :NUM_CLASSES]


def init_params(key):
    """Deterministic synthetic parameters (shapes from the module's __init__)."""
    k1, k2, k3, k4 = jax.random.split(key, 4)
    # conv1: weight (512, 128, 1, 1), bias (512,)  -> stored transposed as (128, 512)
    w1 = jax.random.normal(k1, (C_IN, C_MID), jnp.float32) * (1.0 / math.sqrt(C_IN))
    b1 = jax.random.normal(k2, (1, C_MID), jnp.float32) * 0.01
    # linear1: weight (num_classes, 512), bias (num_classes,) -> transposed (512, nc)
    w2 = jax.random.normal(k3, (C_MID, NUM_CLASSES), jnp.float32) * (1.0 / math.sqrt(C_MID))
    b2 = jax.random.normal(k4, (1, NUM_CLASSES), jnp.float32) * 0.01
    return w1, b1, w2, b2


def _reference(h, l, params):
    """Pure-JAX f32 reference of the module's forward (conv1 -> avg_pool -> linear)."""
    w1, b1, w2, b2 = params
    n = h.shape[0]
    x = jnp.concatenate([h, l], axis=1)                          # (N, 128, 5, 5)
    x = jnp.transpose(x, (0, 2, 3, 1)).reshape(n * PIX, C_IN)    # (N*25, 128)
    y = x @ w1 + b1                                              # conv1 (1x1)
    y = y.reshape(n, PIX, C_MID).mean(axis=1)                    # avg_pool2d(5) + reshape
    return y @ w2 + b2                                           # linear1


if __name__ == "__main__":
    key = jax.random.PRNGKey(0)
    kp, kh, kl, khp, klp = jax.random.split(key, 5)
    params = init_params(kp)

    N = 2
    h = jax.random.normal(kh, (N, C_H, H, W), jnp.float32)
    l = jax.random.normal(kl, (N, C_L, H, W), jnp.float32)
    # h_p / l_p are unused by forward; shapes match conv_h/conv_l inputs (60 channels)
    # TODO(synk): conv_h / conv_l are defined in __init__ but never used in forward.
    h_p = jax.random.normal(khp, (N, 60, H, W), jnp.float32)
    l_p = jax.random.normal(klp, (N, 60, H, W), jnp.float32)

    fwd = jax.jit(classify_forward)
    out = fwd(h, l, h_p, l_p, params)
    out = jax.block_until_ready(out)

    ref = _reference(h, l, params)
    assert out.shape == (N, NUM_CLASSES), out.shape
    # bf16 MXU operands (f32 accumulation, f32-folded weights) vs. pure-f32 reference
    assert jnp.allclose(out, ref, atol=2e-2, rtol=2e-2), (out, ref)

    print("KERNEL_OK")
</pallas_src>

<mosaic_0001>
module attributes {stable_mosaic.version = 11 : i64} {
  func.func @classify_kernel(%arg0: i32, %arg1: memref<8x1600xf32, #tpu.memory_space<vmem>>, %arg2: memref<8x1600xf32, #tpu.memory_space<vmem>>, %arg3: memref<1600x128xbf16, #tpu.memory_space<vmem>>, %arg4: memref<1600x128xbf16, #tpu.memory_space<vmem>>, %arg5: memref<1x128xf32, #tpu.memory_space<vmem>>, %arg6: memref<8x128xf32, #tpu.memory_space<vmem>>) attributes {dimension_semantics = [#tpu.dimension_semantics<parallel>], iteration_bounds = array<i64: 1>, scalar_prefetch = 0 : i64, scratch_operands = 0 : i64, tpu.core_type = #tpu.core_type<tc>, window_params = [{transform_indices = @transform_0, window_bounds = array<i64: 8, 1600>}, {transform_indices = @transform_1, window_bounds = array<i64: 8, 1600>}, {pipeline_mode = #tpu.pipeline_mode<synchronous>, transform_indices = @transform_2, window_bounds = array<i64: 1600, 128>}, {pipeline_mode = #tpu.pipeline_mode<synchronous>, transform_indices = @transform_3, window_bounds = array<i64: 1600, 128>}, {pipeline_mode = #tpu.pipeline_mode<synchronous>, transform_indices = @transform_4, window_bounds = array<i64: 1, 128>}, {transform_indices = @transform_5, window_bounds = array<i64: 8, 128>}]} {
    %c0 = arith.constant 0 : index
    %c0_0 = arith.constant 0 : index
    %0 = vector.load %arg1[%c0, %c0_0] : memref<8x1600xf32, #tpu.memory_space<vmem>>, vector<8x1600xf32>
    %1 = arith.truncf %0 : vector<8x1600xf32> to vector<8x1600xbf16>
    %c0_1 = arith.constant 0 : index
    %c0_2 = arith.constant 0 : index
    %2 = vector.load %arg2[%c0_1, %c0_2] : memref<8x1600xf32, #tpu.memory_space<vmem>>, vector<8x1600xf32>
    %3 = arith.truncf %2 : vector<8x1600xf32> to vector<8x1600xbf16>
    %c0_3 = arith.constant 0 : index
    %c0_4 = arith.constant 0 : index
    %4 = vector.load %arg3[%c0_3, %c0_4] : memref<1600x128xbf16, #tpu.memory_space<vmem>>, vector<1600x128xbf16>
    %cst = arith.constant dense<0.000000e+00> : vector<8x128xf32>
    %5 = tpu.matmul %1, %4, %cst {dimension_numbers = #tpu.dot_dimension_numbers<[1], [0], [0], [1], [0, 0, 1, 1], [], []>} : vector<8x1600xbf16>, vector<1600x128xbf16>, vector<8x128xf32> -> vector<8x128xf32>
    %c0_5 = arith.constant 0 : index
    %c0_6 = arith.constant 0 : index
    %6 = vector.load %arg4[%c0_5, %c0_6] : memref<1600x128xbf16, #tpu.memory_space<vmem>>, vector<1600x128xbf16>
    %cst_7 = arith.constant dense<0.000000e+00> : vector<8x128xf32>
    %7 = tpu.matmul %3, %6, %cst_7 {dimension_numbers = #tpu.dot_dimension_numbers<[1], [0], [0], [1], [0, 0, 1, 1], [], []>} : vector<8x1600xbf16>, vector<1600x128xbf16>, vector<8x128xf32> -> vector<8x128xf32>
    %8 = arith.addf %5, %7 : vector<8x128xf32>
    %c0_8 = arith.constant 0 : index
    %c0_9 = arith.constant 0 : index
    %9 = vector.load %arg5[%c0_8, %c0_9] : memref<1x128xf32, #tpu.memory_space<vmem>>, vector<1x128xf32>
    %10 = vector.broadcast %9 : vector<1x128xf32> to vector<8x128xf32>
    %11 = arith.addf %8, %10 : vector<8x128xf32>
    %c0_10 = arith.constant 0 : index
    %c0_11 = arith.constant 0 : index
    %12 = vector.load %arg6[%c0_10, %c0_11] : memref<8x128xf32, #tpu.memory_space<vmem>>, vector<8x128xf32>
    tpu.vector_store %arg6[%c0_10, %c0_11], %11 {strides = array<i32>} : memref<8x128xf32, #tpu.memory_space<vmem>>, vector<8x128xf32>,
    return
  }
  func.func @transform_0(%arg0: i32) -> (i32, i32) {
    %c0_i32 = arith.constant 0 : i32
    %c0_i32_0 = arith.constant 0 : i32
    return %arg0, %c0_i32 : i32, i32
  }
  func.func @transform_1(%arg0: i32) -> (i32, i32) {
    %c0_i32 = arith.constant 0 : i32
    %c0_i32_0 = arith.constant 0 : i32
    return %arg0, %c0_i32 : i32, i32
  }
  func.func @transform_2(%arg0: i32) -> (i32, i32) {
    %c0_i32 = arith.constant 0 : i32
    %c0_i32_0 = arith.constant 0 : i32
    %c0_i32_1 = arith.constant 0 : i32
    return %c0_i32, %c0_i32_0 : i32, i32
  }
  func.func @transform_3(%arg0: i32) -> (i32, i32) {
    %c0_i32 = arith.constant 0 : i32
    %c0_i32_0 = arith.constant 0 : i32
    %c0_i32_1 = arith.constant 0 : i32
    return %c0_i32, %c0_i32_0 : i32, i32
  }
  func.func @transform_4(%arg0: i32) -> (i32, i32) {
    %c0_i32 = arith.constant 0 : i32
    %c0_i32_0 = arith.constant 0 : i32
    %c0_i32_1 = arith.constant 0 : i32
    return %c0_i32, %c0_i32_0 : i32, i32
  }
  func.func @transform_5(%arg0: i32) -> (i32, i32) {
    %c0_i32 = arith.constant 0 : i32
    %c0_i32_0 = arith.constant 0 : i32
    return %arg0, %c0_i32 : i32, i32
  }
}

</mosaic_0001>

<bundles_post_ra>
// kernel: classify_forward.1
= control target key start
LH: loop header
LB: loop body
LE: loop exit
PB: predicated region body
PF: predicated region fallthrough
CT: control target
= control target key end

     0   :  { %vm2957_vm0 = vmmov 0   ;;  %vm1073_vm1 = vcmask 523264   ;;  %s3686_s3 = inlined_call_operand.vmem [shape: bf16[1600,128], index: 3, kind: input, shape index: {}]   ;;  %s3687_s1 = inlined_call_operand.vmem [shape: f32[8,1600], index: 1, kind: input, shape index: {}]   ;;  %s3688_s2 = inlined_call_operand.vmem [shape: bf16[1600,128], index: 2, kind: input, shape index: {}]   ;;  %s3689_s0 = inlined_call_operand.vmem [shape: f32[8,1600], index: 0, kind: input, shape index: {}]   ;;  %s3690_s4 = inlined_call_operand.vmem [shape: f32[1,128], index: 4, kind: input, shape index: {}]   ;;  %s3691_s5 = inlined_call_operand.vmem [shape: f32[8,128], index: 5, kind: output, shape index: {}]  }
   0x1   :  { %v2756_v0 = vld [vmem:[%s3686_s3 + $0x78] sm:$0xff]   ;;  %v2760_v4 = vld [vmem:[%s3686_s3 + $0x70] sm:$0xff]   ;;  %v2764_v8 = vld [vmem:[%s3686_s3 + $0x68] sm:$0xff]  }
   0x2   :  { %v2757_v1 = vld [vmem:[%s3686_s3 + $0xf8] sm:$0xff]   ;;  %2456 = vmatprep.subr.bf16.mxu0 %v2756_v0  ;;  %v2761_v5 = vld [vmem:[%s3686_s3 + $0xf0] sm:$0xff]   ;;  %v2765_v9 = vld [vmem:[%s3686_s3 + $0xe8] sm:$0xff]  }
   0x3   :  { %v2758_v2 = vld [vmem:[%s3686_s3 + $0x38] sm:$0xff]   ;;  %2478 = vmatprep.subr.bf16.mxu1 %v2757_v1  ;;  %v2762_v6 = vld [vmem:[%s3686_s3 + $0x30] sm:$0xff]   ;;  %v2766_v10 = vld [vmem:[%s3686_s3 + $0x28] sm:$0xff]  }
   0x4   :  { %v2759_v3 = vld [vmem:[%s3686_s3 + $0xb8] sm:$0xff]   ;;  %2457 = vmatpush3.bf16.msra.mxu0 %v2758_v2  ;;  %v2763_v7 = vld [vmem:[%s3686_s3 + $0xb0] sm:$0xff]   ;;  %v2767_v11 = vld [vmem:[%s3686_s3 + $0xa8] sm:$0xff]  }
   0x5   :  { %2479 = vmatpush3.bf16.msra.mxu1 %v2759_v3  ;;  %2458 = vmatprep.subr.bf16.mxu0 %v2760_v4  ;;  %v2768_v12 = vld [vmem:[%s3686_s3 + $0x60] sm:$0xff]   ;;  %v2772_v16 = vld [vmem:[%s3686_s3 + $0x58] sm:$0xff]   ;;  %v2776_v20 = vld [vmem:[%s3686_s3 + $0x50] sm:$0xff]  }
   0x6   :  { %2480 = vmatprep.subr.bf16.mxu1 %v2761_v5  ;;  %v2769_v13 = vld [vmem:[%s3686_s3 + $0xe0] sm:$0xff]   ;;  %v2773_v17 = vld [vmem:[%s3686_s3 + $0xd8] sm:$0xff]   ;;  %v2777_v21 = vld [vmem:[%s3686_s3 + $0xd0] sm:$0xff]  }
   0x7   :  { %v2770_v14 = vld [vmem:[%s3686_s3 + $0x20] sm:$0xff]   ;;  %v2774_v18 = vld [vmem:[%s3686_s3 + $0x18] sm:$0xff]   ;;  %v2778_v22 = vld [vmem:[%s3686_s3 + $0x10] sm:$0xff]  }
   0x8   :  { %2459 = vmatpush3.bf16.msra.mxu0 %v2762_v6  ;;  %v2771_v15 = vld [vmem:[%s3686_s3 + $0xa0] sm:$0xff]   ;;  %v2775_v19 = vld [vmem:[%s3686_s3 + $0x98] sm:$0xff]   ;;  %v2779_v23 = vld [vmem:[%s3686_s3 + $0x90] sm:$0xff]  }
   0x9   :  { %2481 = vmatpush3.bf16.msra.mxu1 %v2763_v7  ;;  %2460 = vmatprep.subr.bf16.mxu0 %v2764_v8  ;;  %v2780_v24 = vld [vmem:[%s3686_s3 + $0x48] sm:$0xff]   ;;  %v2784_v28 = vld [vmem:[%s3686_s3 + $0x40] sm:$0xff]   ;;  %v50_v33 = vld [vmem:[%s3687_s1 + $0x18] sm:$0xff] }
   0xa   :  { %2482 = vmatprep.subr.bf16.mxu1 %v2765_v9  ;;  %v2781_v25 = vld [vmem:[%s3686_s3 + $0xc8] sm:$0xff]   ;;  %v2785_v29 = vld [vmem:[%s3686_s3 + $0xc0] sm:$0xff]   ;;  %v63_v36 = vpack.c.bf16 %v50_v33, %v50_v33  ;;  %v49_v38 = vld [vmem:[%s3687_s1 + $0x10] sm:$0xff] }
   0xb   :  { %v2782_v26 = vld [vmem:[%s3686_s3 + $0x8] sm:$0xff]   ;;  %v2786_v30 = vld [vmem:[%s3686_s3] sm:$0xff]   ;;  %v62_v39 = vpack.c.bf16 %v49_v38, %v49_v38  ;;  %v2788_v40 = vld [vmem:[%s3686_s3 + $0x178] sm:$0xff]  }
   0xc   :  { %2461 = vmatpush3.bf16.msra.mxu0 %v2766_v10  ;;  %v2783_v27 = vld [vmem:[%s3686_s3 + $0x88] sm:$0xff]   ;;  %v2787_v31 = vld [vmem:[%s3686_s3 + $0x80] sm:$0xff]   ;;  %1149 = vmatprep.mubr.bf16.mxu1 %v63_v36  ;;  %v2789_v41 = vld [vmem:[%s3686_s3 + $0x1f8] sm:$0xff]  }
   0xd   :  { %2483 = vmatpush3.bf16.msra.mxu1 %v2767_v11  ;;  %2462 = vmatprep.subr.bf16.mxu0 %v2768_v12  ;;  %v48_v32 = vld [vmem:[%s3687_s1 + $0x8] sm:$0xff]  ;;  %v47_v34 = vld [vmem:[%s3687_s1] sm:$0xff]  ;;  %v2790_v42 = vld [vmem:[%s3686_s3 + $0x138] sm:$0xff]  }
   0xe   :  { %2484 = vmatprep.subr.bf16.mxu1 %v2769_v13  ;;  %v61_v35 = vpack.c.bf16 %v48_v32, %v48_v32  ;;  %v60_v37 = vpack.c.bf16 %v47_v34, %v47_v34  ;;  %v2791_v43 = vld [vmem:[%s3686_s3 + $0x1b8] sm:$0xff]   ;;  %v2792_v44 = vld [vmem:[%s3686_s3 + $0x170] sm:$0xff]   ;;  %v2796_v48 = vld [vmem:[%s3686_s3 + $0x168] sm:$0xff]  }
   0xf   :  { %v2793_v45 = vld [vmem:[%s3686_s3 + $0x1f0] sm:$0xff]   ;;  %v2797_v49 = vld [vmem:[%s3686_s3 + $0x1e8] sm:$0xff]   ;;  %v2800_v52 = vld [vmem:[%s3686_s3 + $0x160] sm:$0xff]  }
  0x10   :  { %2463 = vmatpush3.bf16.msra.mxu0 %v2770_v14  ;;  %1109 = vmatprep.mubr.bf16.mxu0 %v61_v35  ;;  %v2794_v46 = vld [vmem:[%s3686_s3 + $0x130] sm:$0xff]   ;;  %v2798_v50 = vld [vmem:[%s3686_s3 + $0x128] sm:$0xff]   ;;  %v2801_v53 = vld [vmem:[%s3686_s3 + $0x1e0] sm:$0xff]  }
  0x11   :  { %2485 = vmatpush3.bf16.msra.mxu1 %v2771_v15  ;;  %2464 = vmatprep.subr.bf16.mxu0 %v2772_v16  ;;  %v2795_v47 = vld [vmem:[%s3686_s3 + $0x1b0] sm:$0xff]   ;;  %v2799_v51 = vld [vmem:[%s3686_s3 + $0x1a8] sm:$0xff]   ;;  %v2802_v54 = vld [vmem:[%s3686_s3 + $0x120] sm:$0xff]  }
  0x12   :  { %2486 = vmatprep.subr.bf16.mxu1 %v2773_v17  ;;  %v2803_v55 = vld [vmem:[%s3686_s3 + $0x1a0] sm:$0xff]   ;;  %v2804_v56 = vld [vmem:[%s3686_s3 + $0x158] sm:$0xff]   ;;  %v2808_v60 = vld [vmem:[%s3686_s3 + $0x150] sm:$0xff]  }
  0x13   :  { %v2805_v57 = vld [vmem:[%s3686_s3 + $0x1d8] sm:$0xff]   ;;  %v2809_v61 = vld [vmem:[%s3686_s3 + $0x1d0] sm:$0xff]   ;;  %v2812_v0 = vld [vmem:[%s3686_s3 + $0x148] sm:$0xff]  }
  0x14   :  { %2465 = vmatpush3.bf16.msra.mxu0 %v2774_v18  ;;  %v2806_v58 = vld [vmem:[%s3686_s3 + $0x118] sm:$0xff]   ;;  %v2810_v62 = vld [vmem:[%s3686_s3 + $0x110] sm:$0xff]   ;;  %v2813_v1 = vld [vmem:[%s3686_s3 + $0x1c8] sm:$0xff]  }
  0x15   :  { %2487 = vmatpush3.bf16.msra.mxu1 %v2775_v19  ;;  %2466 = vmatprep.subr.bf16.mxu0 %v2776_v20  ;;  %v2807_v59 = vld [vmem:[%s3686_s3 + $0x198] sm:$0xff]   ;;  %v2811_v63 = vld [vmem:[%s3686_s3 + $0x190] sm:$0xff]   ;;  %v2814_v2 = vld [vmem:[%s3686_s3 + $0x108] sm:$0xff]  }
  0x16   :  { %2488 = vmatprep.subr.bf16.mxu1 %v2777_v21  ;;  %v2815_v3 = vld [vmem:[%s3686_s3 + $0x188] sm:$0xff]   ;;  %v2816_v4 = vld [vmem:[%s3686_s3 + $0x140] sm:$0xff]   ;;  %v54_v9 = vld [vmem:[%s3687_s1 + $0x38] sm:$0xff] }
  0x17   :  { %v2817_v5 = vld [vmem:[%s3686_s3 + $0x1c0] sm:$0xff]   ;;  %v52_v8 = vld [vmem:[%s3687_s1 + $0x28] sm:$0xff]  ;;  %v67_v11 = vpack.c.bf16 %v54_v9, %v54_v9  ;;  %v53_v13 = vld [vmem:[%s3687_s1 + $0x30] sm:$0xff] }
  0x18   :  { %2467 = vmatpush3.bf16.msra.mxu0 %v2778_v22  ;;  %v2818_v6 = vld [vmem:[%s3686_s3 + $0x100] sm:$0xff]   ;;  %v65_v10 = vpack.c.bf16 %v52_v8, %v52_v8  ;;  %v66_v15 = vpack.c.bf16 %v53_v13, %v53_v13  ;;  %v2820_v16 = vld [vmem:[%s3686_s3 + $0x278] sm:$0xff]   ;;  %v2824_v20 = vld [vmem:[%s3686_s3 + $0x270] sm:$0xff]  }
  0x19   :  { %2489 = vmatpush3.bf16.msra.mxu1 %v2779_v23  ;;  %2468 = vmatprep.subr.bf16.mxu0 %v2780_v24  ;;  %v2819_v7 = vld [vmem:[%s3686_s3 + $0x180] sm:$0xff]   ;;  %v2821_v17 = vld [vmem:[%s3686_s3 + $0x2f8] sm:$0xff]   ;;  %v2825_v21 = vld [vmem:[%s3686_s3 + $0x2f0] sm:$0xff]  }
  0x1a   :  { %2490 = vmatprep.subr.bf16.mxu1 %v2781_v25  ;;  %v51_v12 = vld [vmem:[%s3687_s1 + $0x20] sm:$0xff]  ;;  %v2822_v18 = vld [vmem:[%s3686_s3 + $0x238] sm:$0xff]   ;;  %v2826_v22 = vld [vmem:[%s3686_s3 + $0x230] sm:$0xff]  }
  0x1b   :  { %v64_v14 = vpack.c.bf16 %v51_v12, %v51_v12  ;;  %v2823_v19 = vld [vmem:[%s3686_s3 + $0x2b8] sm:$0xff]   ;;  %v2827_v23 = vld [vmem:[%s3686_s3 + $0x2b0] sm:$0xff]   ;;  %v2828_v24 = vld [vmem:[%s3686_s3 + $0x268] sm:$0xff]  }
  0x1c   :  { %2469 = vmatpush3.bf16.msra.mxu0 %v2782_v26  ;;  %v2829_v25 = vld [vmem:[%s3686_s3 + $0x2e8] sm:$0xff]   ;;  %v2836_v32 = vld [vmem:[%s3686_s3 + $0x258] sm:$0xff]   ;;  %v2840_v36 = vld [vmem:[%s3686_s3 + $0x250] sm:$0xff]  }
  0x1d   :  { %2491 = vmatpush3.bf16.msra.mxu1 %v2783_v27  ;;  %2470 = vmatprep.subr.bf16.mxu0 %v2784_v28  ;;  %v2830_v26 = vld [vmem:[%s3686_s3 + $0x228] sm:$0xff]   ;;  %v2832_v28 = vld [vmem:[%s3686_s3 + $0x260] sm:$0xff]   ;;  %v2837_v33 = vld [vmem:[%s3686_s3 + $0x2d8] sm:$0xff]  }
  0x1e   :  { %2492 = vmatprep.subr.bf16.mxu1 %v2785_v29  ;;  %v2831_v27 = vld [vmem:[%s3686_s3 + $0x2a8] sm:$0xff]   ;;  %v2833_v29 = vld [vmem:[%s3686_s3 + $0x2e0] sm:$0xff]   ;;  %v2838_v34 = vld [vmem:[%s3686_s3 + $0x218] sm:$0xff]  }
  0x1f   :  { %v2839_v35 = vld [vmem:[%s3686_s3 + $0x298] sm:$0xff]   ;;  %v2842_v38 = vld [vmem:[%s3686_s3 + $0x210] sm:$0xff]  }
  0x20   :  { %2471 = vmatpush3.bf16.msra.mxu0 %v2786_v30  ;;  %v2834_v30 = vld [vmem:[%s3686_s3 + $0x220] sm:$0xff]   ;;  %v2866_v9 = vld [vmem:[%s3688_s2 + $0x18] sm:$0xff]   ;;  %v2869_v12 = vld [vmem:[%s3688_s2 + $0xf0] sm:$0xff]  }
  0x21   :  { %2493 = vmatpush3.bf16.msra.mxu1 %v2787_v31  ;;  %2500 = vmatprep.subr.bf16.mxu0 %v2788_v40  ;;  %v2835_v31 = vld [vmem:[%s3686_s3 + $0x2a0] sm:$0xff]   ;;  %v2844_v40 = vld [vmem:[%s3686_s3 + $0x248] sm:$0xff]   ;;  %v2870_v13 = vld [vmem:[%s3688_s2 + $0x10] sm:$0xff]  }
  0x22   :  { %2522 = vmatprep.subr.bf16.mxu1 %v2789_v41  ;;  %v2845_v41 = vld [vmem:[%s3686_s3 + $0x2c8] sm:$0xff]  }
  0x23   :  { %1110 = vmatmul.mubr.bf16.vlgmr.msra.gmra.mxu0 %v60_v37  ;;  %v2841_v37 = vld [vmem:[%s3686_s3 + $0x2d0] sm:$0xff]  }
  0x24   :  { %1150 = vmatmul.mubr.bf16.vlgmr.msra.gmra.mxu1 %v62_v39  ;;  %2501 = vmatpush3.bf16.msra.mxu0 %v2790_v42  ;;  %v2843_v39 = vld [vmem:[%s3686_s3 + $0x290] sm:$0xff]   ;;  %v2846_v42 = vld [vmem:[%s3686_s3 + $0x208] sm:$0xff]  }
  0x25   :  { %2523 = vmatpush3.bf16.msra.mxu1 %v2791_v43  ;;  %2502 = vmatprep.subr.bf16.mxu0 %v2792_v44  ;;  %v2847_v43 = vld [vmem:[%s3686_s3 + $0x288] sm:$0xff]   ;;  %v2848_v44 = vld [vmem:[%s3686_s3 + $0x240] sm:$0xff]  }
  0x26   :  { %2524 = vmatprep.subr.bf16.mxu1 %v2793_v45  ;;  %1189 = vmatprep.mubr.bf16.mxu0 %v65_v10  ;;  %v2849_v45 = vld [vmem:[%s3686_s3 + $0x2c0] sm:$0xff]   ;;  %v2867_v10 = vld [vmem:[%s3688_s2 + $0xb8] sm:$0xff]  }
  0x27   :  { %1229 = vmatprep.mubr.bf16.mxu1 %v67_v11  ;;  %v2868_v11 = vld [vmem:[%s3688_s2 + $0x50] sm:$0xff]  }
  0x28   :  { %2503 = vmatpush3.bf16.msra.mxu0 %v2794_v46  ;;  %v2850_v46 = vld [vmem:[%s3686_s3 + $0x200] sm:$0xff]  }
  0x29   :  { %2525 = vmatpush3.bf16.msra.mxu1 %v2795_v47  ;;  %2504 = vmatprep.subr.bf16.mxu0 %v2796_v48  ;;  %v2851_v47 = vld [vmem:[%s3686_s3 + $0x280] sm:$0xff]   ;;  %v56_v48 = vld [vmem:[%s3687_s1 + $0x48] sm:$0xff] }
  0x2a   :  { %2526 = vmatprep.subr.bf16.mxu1 %v2797_v49  ;;  %v69_v49 = vpack.c.bf16 %v56_v48, %v56_v48  ;;  %v2897_v48 = vld [vmem:[%s3688_s2 + $0x1f8] sm:$0xff]  }
  0x2c   :  { %2505 = vmatpush3.bf16.msra.mxu0 %v2798_v50  ;;  %v58_v50 = vld [vmem:[%s3687_s1 + $0x58] sm:$0xff] }
  0x2d   :  { %2527 = vmatpush3.bf16.msra.mxu1 %v2799_v51  ;;  %2506 = vmatprep.subr.bf16.mxu0 %v2800_v52  ;;  %v55_v51 = vld [vmem:[%s3687_s1 + $0x40] sm:$0xff]  ;;  %v57_v52 = vld [vmem:[%s3687_s1 + $0x50] sm:$0xff] }
  0x2e   :  { %2528 = vmatprep.subr.bf16.mxu1 %v2801_v53  ;;  %v71_v53 = vpack.c.bf16 %v58_v50, %v58_v50  ;;  %v2899_v50 = vld [vmem:[%s3688_s2 + $0x1b8] sm:$0xff]  }
  0x30   :  { %2507 = vmatpush3.bf16.msra.mxu0 %v2802_v54  ;;  %v68_v54 = vpack.c.bf16 %v55_v51, %v55_v51  ;;  %v2900_v51 = vld [vmem:[%s3688_s2 + $0x150] sm:$0xff]  }
  0x31   :  { %2529 = vmatpush3.bf16.msra.mxu1 %v2803_v55  ;;  %2508 = vmatprep.subr.bf16.mxu0 %v2804_v56  ;;  %v70_v55 = vpack.c.bf16 %v57_v52, %v57_v52  ;;  %v2956_v56 = vmov 0.0   ;;  %v2901_v52 = vld [vmem:[%s3688_s2 + $0x1f0] sm:$0xff]  }
  0x32   :  { %2530 = vmatprep.subr.bf16.mxu1 %v2805_v57  ;;  %v2852_v57 = vld [vmem:[%s3688_s2 + $0x78] sm:$0xff]  }
  0x34   :  { %2509 = vmatpush3.bf16.msra.mxu0 %v2806_v58  ;;  %v2853_v58 = vld [vmem:[%s3686_s3 + $0x318] sm:$0xff]  }
  0x35   :  { %2531 = vmatpush3.bf16.msra.mxu1 %v2807_v59  ;;  %2510 = vmatprep.subr.bf16.mxu0 %v2808_v60  ;;  %v2854_v59 = vld [vmem:[%s3688_s2 + $0x38] sm:$0xff]   ;;  %v2855_v60 = vld [vmem:[%s3688_s2 + $0x70] sm:$0xff]  }
  0x36   :  { %2532 = vmatprep.subr.bf16.mxu1 %v2809_v61  ;;  %v2856_v61 = vld [vmem:[%s3686_s3 + $0x310] sm:$0xff]  }
  0x38   :  { %2511 = vmatpush3.bf16.msra.mxu0 %v2810_v62  ;;  %v2857_v62 = vld [vmem:[%s3688_s2 + $0x30] sm:$0xff]  }
  0x39   :  { %2533 = vmatpush3.bf16.msra.mxu1 %v2811_v63  ;;  %2512 = vmatprep.subr.bf16.mxu0 %v2812_v0  ;;  %v2858_v63 = vld [vmem:[%s3688_s2 + $0x68] sm:$0xff]  }
  0x3a   :  { %2534 = vmatprep.subr.bf16.mxu1 %v2813_v1  ;;  %v2859_v0 = vld [vmem:[%s3686_s3 + $0x308] sm:$0xff]  }
  0x3b   :  { %v2860_v1 = vld [vmem:[%s3688_s2 + $0x28] sm:$0xff]  }
  0x3c   :  { %2513 = vmatpush3.bf16.msra.mxu0 %v2814_v2  ;;  %v2861_v2 = vld [vmem:[%s3688_s2 + $0x60] sm:$0xff]  }
  0x3d   :  { %2535 = vmatpush3.bf16.msra.mxu1 %v2815_v3  ;;  %2514 = vmatprep.subr.bf16.mxu0 %v2816_v4  ;;  %v2862_v3 = vld [vmem:[%s3686_s3 + $0x300] sm:$0xff]  }
  0x3e   :  { %2536 = vmatprep.subr.bf16.mxu1 %v2817_v5  ;;  %v2863_v4 = vld [vmem:[%s3688_s2 + $0x20] sm:$0xff]  }
  0x3f   :  { %v59_v5 = vld [vmem:[%s3687_s1 + $0x60] sm:$0xff] }
  0x40   :  { %2515 = vmatpush3.bf16.msra.mxu0 %v2818_v6  ;;  %v2864_v6 = vld [vmem:[%s3688_s2 + $0x58] sm:$0xff]   ;;  %v72_v8 = vpack.c.bf16 %v59_v5, %v59_v5 }
  0x41   :  { %2537 = vmatpush3.bf16.msra.mxu1 %v2819_v7  ;;  %2544 = vmatprep.subr.bf16.mxu0 %v2820_v16  ;;  %v2865_v7 = vld [vmem:[%s3688_s2 + $0xf8] sm:$0xff]   ;;  %v2873_v16 = vld [vmem:[%s3688_s2 + $0xe8] sm:$0xff]  }
  0x42   :  { %2566 = vmatprep.subr.bf16.mxu1 %v2821_v17  ;;  %v2874_v17 = vld [vmem:[%s3688_s2 + $0x8] sm:$0xff]   ;;  %v2913_v5 = vld [vmem:[%s3688_s2 + $0x278] sm:$0xff]  }
  0x43   :  { %1190 = vmatmul.mubr.bf16.vlgmr.msra.gmra.mxu0 %v64_v14  ;;  %v2871_v14 = vld [vmem:[%s3688_s2 + $0xb0] sm:$0xff]  }
  0x44   :  { %1230 = vmatmul.mubr.bf16.vlgmr.msra.gmra.mxu1 %v66_v15  ;;  %2545 = vmatpush3.bf16.msra.mxu0 %v2822_v18  ;;  %v2872_v15 = vld [vmem:[%s3688_s2 + $0x48] sm:$0xff]  }
  0x45   :  { %2567 = vmatpush3.bf16.msra.mxu1 %v2823_v19  ;;  %2546 = vmatprep.subr.bf16.mxu0 %v2824_v20  ;;  %v2875_v18 = vld [vmem:[%s3688_s2 + $0xa8] sm:$0xff]   ;;  %v2876_v19 = vld [vmem:[%s3688_s2 + $0x40] sm:$0xff]  }
  0x46   :  { %2568 = vmatprep.subr.bf16.mxu1 %v2825_v21  ;;  %1269 = vmatprep.mubr.bf16.mxu0 %v69_v49  ;;  %v2877_v20 = vld [vmem:[%s3688_s2 + $0xe0] sm:$0xff]   ;;  %v2898_v49 = vld [vmem:[%s3688_s2 + $0x118] sm:$0xff]  }
  0x47   :  { %1309 = vmatprep.mubr.bf16.mxu1 %v71_v53  ;;  %v2878_v21 = vld [vmem:[%s3688_s2] sm:$0xff]   ;;  %v2902_v53 = vld [vmem:[%s3688_s2 + $0x110] sm:$0xff]  }
  0x48   :  { %2547 = vmatpush3.bf16.msra.mxu0 %v2826_v22  ;;  %v2879_v22 = vld [vmem:[%s3688_s2 + $0xa0] sm:$0xff]  }
  0x49   :  { %2569 = vmatpush3.bf16.msra.mxu1 %v2827_v23  ;;  %2548 = vmatprep.subr.bf16.mxu0 %v2828_v24  ;;  %v22_v23 = vld [vmem:[%s3689_s0 + $0x8] sm:$0xff]  ;;  %v21_v24 = vld [vmem:[%s3689_s0] sm:$0xff] }
  0x4a   :  { %2570 = vmatprep.subr.bf16.mxu1 %v2829_v25  ;;  %v35_v25 = vpack.c.bf16 %v22_v23, %v22_v23 }
  0x4c   :  { %2549 = vmatpush3.bf16.msra.mxu0 %v2830_v26  ;;  %v2880_v26 = vld [vmem:[%s3688_s2 + $0xd8] sm:$0xff]  }
  0x4d   :  { %2571 = vmatpush3.bf16.msra.mxu1 %v2831_v27  ;;  %2550 = vmatprep.subr.bf16.mxu0 %v2832_v28  ;;  %v2881_v27 = vld [vmem:[%s3688_s2 + $0x178] sm:$0xff]   ;;  %v34_v28 = vpack.c.bf16 %v21_v24, %v21_v24 }
  0x4e   :  { %2572 = vmatprep.subr.bf16.mxu1 %v2833_v29  ;;  %v2882_v29 = vld [vmem:[%s3688_s2 + $0x98] sm:$0xff]  }
  0x4f   :  { %v2928_v24 = vld [vmem:[%s3688_s2 + $0x258] sm:$0xff]  }
  0x50   :  { %2551 = vmatpush3.bf16.msra.mxu0 %v2834_v30  ;;  %v2883_v30 = vld [vmem:[%s3688_s2 + $0x138] sm:$0xff]  }
  0x51   :  { %2573 = vmatpush3.bf16.msra.mxu1 %v2835_v31  ;;  %2552 = vmatprep.subr.bf16.mxu0 %v2836_v32  ;;  %v2884_v31 = vld [vmem:[%s3688_s2 + $0xd0] sm:$0xff]  }
  0x52   :  { %2574 = vmatprep.subr.bf16.mxu1 %v2837_v33  ;;  %v2885_v32 = vld [vmem:[%s3688_s2 + $0x170] sm:$0xff]  }
  0x53   :  { %v2886_v33 = vld [vmem:[%s3688_s2 + $0x90] sm:$0xff]  }
  0x54   :  { %2553 = vmatpush3.bf16.msra.mxu0 %v2838_v34  ;;  %v2887_v34 = vld [vmem:[%s3688_s2 + $0x130] sm:$0xff]  }
  0x55   :  { %2575 = vmatpush3.bf16.msra.mxu1 %v2839_v35  ;;  %2554 = vmatprep.subr.bf16.mxu0 %v2840_v36  ;;  %v2888_v35 = vld [vmem:[%s3688_s2 + $0xc8] sm:$0xff]  }
  0x56   :  { %2576 = vmatprep.subr.bf16.mxu1 %v2841_v37  ;;  %v2889_v36 = vld [vmem:[%s3688_s2 + $0x168] sm:$0xff]  }
  0x57   :  { %v2890_v37 = vld [vmem:[%s3688_s2 + $0x88] sm:$0xff]  }
  0x58   :  { %2555 = vmatpush3.bf16.msra.mxu0 %v2842_v38  ;;  %v2891_v38 = vld [vmem:[%s3688_s2 + $0x128] sm:$0xff]  }
  0x59   :  { %2577 = vmatpush3.bf16.msra.mxu1 %v2843_v39  ;;  %2556 = vmatprep.subr.bf16.mxu0 %v2844_v40  ;;  %v2892_v39 = vld [vmem:[%s3688_s2 + $0xc0] sm:$0xff]  }
  0x5a   :  { %2578 = vmatprep.subr.bf16.mxu1 %v2845_v41  ;;  %v2893_v40 = vld [vmem:[%s3688_s2 + $0x160] sm:$0xff]  }
  0x5b   :  { %v2894_v41 = vld [vmem:[%s3688_s2 + $0x80] sm:$0xff]  }
  0x5c   :  { %2557 = vmatpush3.bf16.msra.mxu0 %v2846_v42  ;;  %v2895_v42 = vld [vmem:[%s3688_s2 + $0x120] sm:$0xff]  }
  0x5d   :  { %2579 = vmatpush3.bf16.msra.mxu1 %v2847_v43  ;;  %2558 = vmatprep.subr.bf16.mxu0 %v2848_v44  ;;  %v24_v43 = vld [vmem:[%s3689_s0 + $0x18] sm:$0xff]  ;;  %v23_v44 = vld [vmem:[%s3689_s0 + $0x10] sm:$0xff] }
  0x5e   :  { %2580 = vmatprep.subr.bf16.mxu1 %v2849_v45  ;;  %v37_v45 = vpack.c.bf16 %v24_v43, %v24_v43 }
  0x60   :  { %2559 = vmatpush3.bf16.msra.mxu0 %v2850_v46  ;;  %v2896_v46 = vld [vmem:[%s3688_s2 + $0x158] sm:$0xff]  }
  0x61   :  { %2581 = vmatpush3.bf16.msra.mxu1 %v2851_v47  ;;  %2730 = vmatprep.subr.bf16.mxu0 %v2956_v56  ;;  %v36_v47 = vpack.c.bf16 %v23_v44, %v23_v44  ;;  %v2944_v44 = vld [vmem:[%s3688_s2 + $0x2d8] sm:$0xff]  }
  0x62   :  { %2593 = vmatprep.subr.bf16.mxu1 %v2852_v57  ;;  %v2905_v57 = vld [vmem:[%s3688_s2 + $0x1e8] sm:$0xff]  }
  0x63   :  { %1270 = vmatmul.mubr.bf16.vlgmr.msra.gmra.mxu0 %v68_v54  ;;  %v2903_v54 = vld [vmem:[%s3688_s2 + $0x1b0] sm:$0xff]  }
  0x64   :  { %1310 = vmatmul.mubr.bf16.vlgmr.msra.gmra.mxu1 %v70_v55  ;;  %2731 = vmatpush3.bf16.msra.mxu0 %v2853_v58  ;;  %v2904_v55 = vld [vmem:[%s3688_s2 + $0x148] sm:$0xff]  }
  0x65   :  { %2594 = vmatpush3.bf16.msra.mxu1 %v2854_v59  ;;  %2732 = vmatprep.subr.bf16.mxu0 %v2956_v56  ;;  %v2906_v58 = vld [vmem:[%s3688_s2 + $0x108] sm:$0xff]  }
  0x66   :  { %2595 = vmatprep.subr.bf16.mxu1 %v2855_v60  ;;  %2738 = vmatprep.mubr.msk.bf16.mxu0 %vm2957_vm0, %v2956_v56  ;;  %v2907_v59 = vld [vmem:[%s3688_s2 + $0x1a8] sm:$0xff]   ;;  %v2908_v60 = vld [vmem:[%s3688_s2 + $0x140] sm:$0xff]  }
  0x67   :  { %1992 = vmatprep.mubr.bf16.mxu1 %v35_v25  ;;  %v2929_v25 = vld [vmem:[%s3688_s2 + $0x2f8] sm:$0xff]  }
  0x68   :  { %2733 = vmatpush3.bf16.msra.mxu0 %v2856_v61  ;;  %v2909_v61 = vld [vmem:[%s3688_s2 + $0x1e0] sm:$0xff]  }
  0x69   :  { %2596 = vmatpush3.bf16.msra.mxu1 %v2857_v62  ;;  %2734 = vmatprep.subr.bf16.mxu0 %v2956_v56  ;;  %v2910_v62 = vld [vmem:[%s3688_s2 + $0x100] sm:$0xff]  }
  0x6a   :  { %2597 = vmatprep.subr.bf16.mxu1 %v2858_v63  ;;  %v2911_v63 = vld [vmem:[%s3688_s2 + $0x1a0] sm:$0xff]  }
  0x6c   :  { %2735 = vmatpush3.bf16.msra.mxu0 %v2859_v0  ;;  %v26_v0 = vld [vmem:[%s3689_s0 + $0x28] sm:$0xff] }
  0x6d   :  { %2598 = vmatpush3.bf16.msra.mxu1 %v2860_v1  ;;  %2736 = vmatprep.subr.bf16.mxu0 %v2956_v56  ;;  %v39_v1 = vpack.c.bf16 %v26_v0, %v26_v0 }
  0x6e   :  { %2599 = vmatprep.subr.bf16.mxu1 %v2861_v2  ;;  %v25_v2 = vld [vmem:[%s3689_s0 + $0x20] sm:$0xff] }
  0x70   :  { %2737 = vmatpush3.bf16.msra.mxu0 %v2862_v3  ;;  %v38_v3 = vpack.c.bf16 %v25_v2, %v25_v2 }
  0x71   :  { %2600 = vmatpush3.bf16.msra.mxu1 %v2863_v4  ;;  %2615 = vmatprep.subr.bf16.mxu0 %v2865_v7  ;;  %v2912_v4 = vld [vmem:[%s3688_s2 + $0x1d8] sm:$0xff]  }
  0x72   :  { %2601 = vmatprep.subr.bf16.mxu1 %v2864_v6  ;;  %v2914_v6 = vld [vmem:[%s3688_s2 + $0x198] sm:$0xff]  }
  0x73   :  { %2739 = vmatmul.mubr.msk.bf16.vlgmr.msra.gmra.mxu0 %vm1073_vm1, %v72_v8  ;;  %v2915_v7 = vld [vmem:[%s3688_s2 + $0x238] sm:$0xff]   ;;  %v2916_v8 = vld [vmem:[%s3688_s2 + $0x1d0] sm:$0xff]  }
  0x74   :  { %2616 = vmatpush3.bf16.msra.mxu0 %v2867_v10  ;;  %2032 = vmatprep.mubr.bf16.mxu0 %v37_v45  ;;  %v2918_v10 = vld [vmem:[%s3688_s2 + $0x190] sm:$0xff]   ;;  %v2945_v45 = vld [vmem:[%s3688_s2 + $0x298] sm:$0xff]  }
  0x75   :  { %2602 = vmatpush3.bf16.msra.mxu1 %v2866_v9  ;;  %2617 = vmatprep.subr.bf16.mxu0 %v2869_v12  ;;  %v2917_v9 = vld [vmem:[%s3688_s2 + $0x270] sm:$0xff]   ;;  %v2920_v12 = vld [vmem:[%s3688_s2 + $0x1c8] sm:$0xff]  }
  0x76   :  { %2603 = vmatprep.subr.bf16.mxu1 %v2868_v11  ;;  %v2919_v11 = vld [vmem:[%s3688_s2 + $0x230] sm:$0xff]  }
  0x78   :  { %2618 = vmatpush3.bf16.msra.mxu0 %v2871_v14  ;;  %v2922_v14 = vld [vmem:[%s3688_s2 + $0x188] sm:$0xff]  }
  0x79   :  { %2604 = vmatpush3.bf16.msra.mxu1 %v2870_v13  ;;  %2619 = vmatprep.subr.bf16.mxu0 %v2873_v16  ;;  %v2921_v13 = vld [vmem:[%s3688_s2 + $0x268] sm:$0xff]   ;;  %v2924_v16 = vld [vmem:[%s3688_s2 + $0x1c0] sm:$0xff]  }
  0x7a   :  { %2605 = vmatprep.subr.bf16.mxu1 %v2872_v15  ;;  %v2923_v15 = vld [vmem:[%s3688_s2 + $0x228] sm:$0xff]  }
  0x7c   :  { %2620 = vmatpush3.bf16.msra.mxu0 %v2875_v18  ;;  %v2926_v18 = vld [vmem:[%s3688_s2 + $0x180] sm:$0xff]  }
  0x7d   :  { %2606 = vmatpush3.bf16.msra.mxu1 %v2874_v17  ;;  %2621 = vmatprep.subr.bf16.mxu0 %v2877_v20  ;;  %v2925_v17 = vld [vmem:[%s3688_s2 + $0x260] sm:$0xff]   ;;  %v28_v20 = vld [vmem:[%s3689_s0 + $0x38] sm:$0xff] }
  0x7e   :  { %2607 = vmatprep.subr.bf16.mxu1 %v2876_v19  ;;  %v2927_v19 = vld [vmem:[%s3688_s2 + $0x220] sm:$0xff]  }
  0x80   :  { %2622 = vmatpush3.bf16.msra.mxu0 %v2879_v22  ;;  %v41_v22 = vpack.c.bf16 %v28_v20, %v28_v20 }
  0x81   :  { %2608 = vmatpush3.bf16.msra.mxu1 %v2878_v21  ;;  %2623 = vmatprep.subr.bf16.mxu0 %v2880_v26  ;;  %v27_v21 = vld [vmem:[%s3689_s0 + $0x30] sm:$0xff]  ;;  %v2930_v26 = vld [vmem:[%s3688_s2 + $0x218] sm:$0xff]  }
  0x82   :  { %2637 = vmatprep.subr.bf16.mxu1 %v2881_v27  ;;  %v40_v23 = vpack.c.bf16 %v27_v21, %v27_v21  ;;  %v2931_v27 = vld [vmem:[%s3688_s2 + $0x2b8] sm:$0xff]  }
  0x84   :  { %1993 = vmatmul.mubr.bf16.vlgmr.msra.gmra.mxu1 %v34_v28  ;;  %2624 = vmatpush3.bf16.msra.mxu0 %v2882_v29  ;;  %v2932_v28 = vld [vmem:[%s3688_s2 + $0x250] sm:$0xff]  }
  0x85   :  { %2638 = vmatpush3.bf16.msra.mxu1 %v2883_v30  ;;  %2625 = vmatprep.subr.bf16.mxu0 %v2884_v31  ;;  %v2933_v29 = vld [vmem:[%s3688_s2 + $0x2f0] sm:$0xff]  }
  0x86   :  { %2639 = vmatprep.subr.bf16.mxu1 %v2885_v32  ;;  %2072 = vmatprep.mubr.bf16.mxu1 %v39_v1  ;;  %v2934_v30 = vld [vmem:[%s3688_s2 + $0x210] sm:$0xff]   ;;  %v2936_v32 = vld [vmem:[%s3688_s2 + $0x248] sm:$0xff]  }
  0x87   :  { %v2935_v31 = vld [vmem:[%s3688_s2 + $0x2b0] sm:$0xff]  }
  0x88   :  { %2626 = vmatpush3.bf16.msra.mxu0 %v2886_v33  ;;  %v2937_v33 = vld [vmem:[%s3688_s2 + $0x2e8] sm:$0xff]  }
  0x89   :  { %2640 = vmatpush3.bf16.msra.mxu1 %v2887_v34  ;;  %2627 = vmatprep.subr.bf16.mxu0 %v2888_v35  ;;  %v2938_v34 = vld [vmem:[%s3688_s2 + $0x208] sm:$0xff]  }
  0x8a   :  { %2641 = vmatprep.subr.bf16.mxu1 %v2889_v36  ;;  %v2939_v35 = vld [vmem:[%s3688_s2 + $0x2a8] sm:$0xff]   ;;  %v2940_v36 = vld [vmem:[%s3688_s2 + $0x240] sm:$0xff]  }
  0x8c   :  { %2628 = vmatpush3.bf16.msra.mxu0 %v2890_v37  ;;  %v2941_v37 = vld [vmem:[%s3688_s2 + $0x2e0] sm:$0xff]  }
  0x8d   :  { %2642 = vmatpush3.bf16.msra.mxu1 %v2891_v38  ;;  %2629 = vmatprep.subr.bf16.mxu0 %v2892_v39  ;;  %v2942_v38 = vld [vmem:[%s3688_s2 + $0x200] sm:$0xff]  }
  0x8e   :  { %2643 = vmatprep.subr.bf16.mxu1 %v2893_v40  ;;  %v2943_v39 = vld [vmem:[%s3688_s2 + $0x2a0] sm:$0xff]   ;;  %v30_v40 = vld [vmem:[%s3689_s0 + $0x48] sm:$0xff] }
  0x90   :  { %2630 = vmatpush3.bf16.msra.mxu0 %v2894_v41  ;;  %v29_v41 = vld [vmem:[%s3689_s0 + $0x40] sm:$0xff] }
  0x91   :  { %2644 = vmatpush3.bf16.msra.mxu1 %v2895_v42  ;;  %2659 = vmatprep.subr.bf16.mxu0 %v2897_v48  ;;  %v43_v42 = vpack.c.bf16 %v30_v40, %v30_v40  ;;  %v42_v43 = vpack.c.bf16 %v29_v41, %v29_v41  ;;  %v2948_v48 = vld [vmem:[%s3688_s2 + $0x290] sm:$0xff]  }
  0x92   :  { %2645 = vmatprep.subr.bf16.mxu1 %v2896_v46  ;;  %v2946_v46 = vld [vmem:[%s3688_s2 + $0x318] sm:$0xff]  }
  0x93   :  { %2033 = vmatmul.mubr.bf16.vlgmr.msra.gmra.mxu0 %v36_v47  ;;  %v2947_v47 = vld [vmem:[%s3688_s2 + $0x2d0] sm:$0xff]  }
  0x94   :  { %2660 = vmatpush3.bf16.msra.mxu0 %v2899_v50  ;;  %2112 = vmatprep.mubr.bf16.mxu0 %v41_v22  ;;  %v2950_v50 = vld [vmem:[%s3688_s2 + $0x2c8] sm:$0xff]  }
  0x95   :  { %2646 = vmatpush3.bf16.msra.mxu1 %v2898_v49  ;;  %2661 = vmatprep.subr.bf16.mxu0 %v2901_v52  ;;  %v2949_v49 = vld [vmem:[%s3688_s2 + $0x310] sm:$0xff]   ;;  %v2952_v52 = vld [vmem:[%s3688_s2 + $0x308] sm:$0xff]  }
  0x96   :  { %2647 = vmatprep.subr.bf16.mxu1 %v2900_v51  ;;  %v2951_v51 = vld [vmem:[%s3688_s2 + $0x288] sm:$0xff]  }
  0x98   :  { %2662 = vmatpush3.bf16.msra.mxu0 %v2903_v54  ;;  %v2954_v54 = vld [vmem:[%s3688_s2 + $0x280] sm:$0xff]  }
  0x99   :  { %2648 = vmatpush3.bf16.msra.mxu1 %v2902_v53  ;;  %2663 = vmatprep.subr.bf16.mxu0 %v2905_v57  ;;  %v2953_v53 = vld [vmem:[%s3688_s2 + $0x2c0] sm:$0xff]  }
  0x9a   :  { %2649 = vmatprep.subr.bf16.mxu1 %v2904_v55  ;;  %v32_v55 = vld [vmem:[%s3689_s0 + $0x58] sm:$0xff]  ;;  %v2955_v57 = vld [vmem:[%s3688_s2 + $0x300] sm:$0xff]  }
  0x9c   :  { %2664 = vmatpush3.bf16.msra.mxu0 %v2907_v59  ;;  %v31_v59 = vld [vmem:[%s3689_s0 + $0x50] sm:$0xff] }
  0x9d   :  { %2650 = vmatpush3.bf16.msra.mxu1 %v2906_v58  ;;  %2665 = vmatprep.subr.bf16.mxu0 %v2909_v61  ;;  %v45_v58 = vpack.c.bf16 %v32_v55, %v32_v55  ;;  %v44_v61 = vpack.c.bf16 %v31_v59, %v31_v59 }
  0x9e   :  { %2651 = vmatprep.subr.bf16.mxu1 %v2908_v60  ;;  %v33_v60 = vld [vmem:[%s3689_s0 + $0x60] sm:$0xff] }
  0xa0   :  { %2666 = vmatpush3.bf16.msra.mxu0 %v2911_v63 }
  0xa1   :  { %2652 = vmatpush3.bf16.msra.mxu1 %v2910_v62  ;;  %2667 = vmatprep.subr.bf16.mxu0 %v2912_v4  ;;  %v46_v62 = vpack.c.bf16 %v33_v60, %v33_v60 }
  0xa2   :  { %2681 = vmatprep.subr.bf16.mxu1 %v2913_v5 }
  0xa4   :  { %2073 = vmatmul.mubr.bf16.vlgmr.msra.gmra.mxu1 %v38_v3  ;;  %2668 = vmatpush3.bf16.msra.mxu0 %v2914_v6 }
  0xa5   :  { %2682 = vmatpush3.bf16.msra.mxu1 %v2915_v7  ;;  %2669 = vmatprep.subr.bf16.mxu0 %v2916_v8 }
  0xa6   :  { %2683 = vmatprep.subr.bf16.mxu1 %v2917_v9  ;;  %2152 = vmatprep.mubr.bf16.mxu1 %v43_v42 }
  0xa8   :  { %2670 = vmatpush3.bf16.msra.mxu0 %v2918_v10 }
  0xa9   :  { %2684 = vmatpush3.bf16.msra.mxu1 %v2919_v11  ;;  %2671 = vmatprep.subr.bf16.mxu0 %v2920_v12 }
  0xaa   :  { %2685 = vmatprep.subr.bf16.mxu1 %v2921_v13 }
  0xac   :  { %2672 = vmatpush3.bf16.msra.mxu0 %v2922_v14 }
  0xad   :  { %2686 = vmatpush3.bf16.msra.mxu1 %v2923_v15  ;;  %2673 = vmatprep.subr.bf16.mxu0 %v2924_v16 }
  0xae   :  { %2687 = vmatprep.subr.bf16.mxu1 %v2925_v17 }
  0xb0   :  { %2674 = vmatpush3.bf16.msra.mxu0 %v2926_v18 }
  0xb1   :  { %2688 = vmatpush3.bf16.msra.mxu1 %v2927_v19  ;;  %2703 = vmatprep.subr.bf16.mxu0 %v2929_v25 }
  0xb2   :  { %2689 = vmatprep.subr.bf16.mxu1 %v2928_v24 }
  0xb3   :  { %2113 = vmatmul.mubr.bf16.vlgmr.msra.gmra.mxu0 %v40_v23 }
  0xb4   :  { %2704 = vmatpush3.bf16.msra.mxu0 %v2931_v27  ;;  %2192 = vmatprep.mubr.bf16.mxu0 %v45_v58 }
  0xb5   :  { %2690 = vmatpush3.bf16.msra.mxu1 %v2930_v26  ;;  %2705 = vmatprep.subr.bf16.mxu0 %v2933_v29 }
  0xb6   :  { %2691 = vmatprep.subr.bf16.mxu1 %v2932_v28 }
  0xb8   :  { %2706 = vmatpush3.bf16.msra.mxu0 %v2935_v31 }
  0xb9   :  { %2692 = vmatpush3.bf16.msra.mxu1 %v2934_v30  ;;  %2707 = vmatprep.subr.bf16.mxu0 %v2937_v33 }
  0xba   :  { %2693 = vmatprep.subr.bf16.mxu1 %v2936_v32 }
  0xbc   :  { %2708 = vmatpush3.bf16.msra.mxu0 %v2939_v35 }
  0xbd   :  { %2694 = vmatpush3.bf16.msra.mxu1 %v2938_v34  ;;  %2709 = vmatprep.subr.bf16.mxu0 %v2941_v37 }
  0xbe   :  { %2695 = vmatprep.subr.bf16.mxu1 %v2940_v36 }
  0xc0   :  { %2710 = vmatpush3.bf16.msra.mxu0 %v2943_v39 }
  0xc1   :  { %2696 = vmatpush3.bf16.msra.mxu1 %v2942_v38  ;;  %2711 = vmatprep.subr.bf16.mxu0 %v2944_v44 }
  0xc2   :  { %2742 = vmatprep.subr.bf16.mxu1 %v2956_v56 }
  0xc4   :  { %2153 = vmatmul.mubr.bf16.vlgmr.msra.gmra.mxu1 %v42_v43  ;;  %2712 = vmatpush3.bf16.msra.mxu0 %v2945_v45 }
  0xc5   :  { %2743 = vmatpush3.bf16.msra.mxu1 %v2946_v46  ;;  %2713 = vmatprep.subr.bf16.mxu0 %v2947_v47 }
  0xc6   :  { %2744 = vmatprep.subr.bf16.mxu1 %v2956_v56  ;;  %2750 = vmatprep.mubr.msk.bf16.mxu1 %vm2957_vm0, %v2956_v56 }
  0xc8   :  { %2714 = vmatpush3.bf16.msra.mxu0 %v2948_v48 }
  0xc9   :  { %2745 = vmatpush3.bf16.msra.mxu1 %v2949_v49  ;;  %2715 = vmatprep.subr.bf16.mxu0 %v2950_v50 }
  0xca   :  { %2746 = vmatprep.subr.bf16.mxu1 %v2956_v56 }
  0xcc   :  { %2716 = vmatpush3.bf16.msra.mxu0 %v2951_v51 }
  0xcd   :  { %2747 = vmatpush3.bf16.msra.mxu1 %v2952_v52  ;;  %2717 = vmatprep.subr.bf16.mxu0 %v2953_v53 }
  0xce   :  { %2748 = vmatprep.subr.bf16.mxu1 %v2956_v56 }
  0xd0   :  { %2718 = vmatpush3.bf16.msra.mxu0 %v2954_v54 }
  0xd1   :  { %2749 = vmatpush3.bf16.msra.mxu1 %v2955_v57 }
  0xd3   :  { %2193 = vmatmul.mubr.bf16.vlgmr.msra.gmra.mxu0 %v44_v61 }
  0xd4   :  { %2751 = vmatmul.mubr.msk.bf16.vlgmr.msra.gmra.mxu1 %vm1073_vm1, %v46_v62 }
  0xe3   :  { %v2472_v63 = vpop.f32.mrf.mxu0 }
  0xe4   :  { %v2494_v0 = vpop.f32.mrf.mxu1 }
  0xe5   :  { %v2473_v1 = vpop.f32.mrf.mxu0 }
  0xe6   :  { %v2495_v2 = vpop.f32.mrf.mxu1  ;;  %v2474_v3 = vadd.f32 %v2473_v1, %v2472_v63 }
  0xe7   :  { %v2496_v4 = vadd.f32 %v2495_v2, %v2494_v0  ;;  %v2475_v5 = vpop.f32.mrf.mxu0 }
  0xe8   :  { %v2497_v6 = vpop.f32.mrf.mxu1 }
  0xe9   :  { %v1152_v7 = vadd.f32 %v2496_v4, %v2474_v3  ;;  %v2476_v8 = vpop.f32.mrf.mxu0 }
  0xea   :  { %v2498_v9 = vpop.f32.mrf.mxu1 }
 0x103   :  { %v2516_v56 = vpop.f32.mrf.mxu0 }
 0x104   :  { %v2538_v10 = vpop.f32.mrf.mxu1 }
 0x105   :  { %v2517_v11 = vpop.f32.mrf.mxu0 }
 0x106   :  { %v2518_v12 = vadd.f32 %v2517_v11, %v2516_v56  ;;  %v2539_v13 = vpop.f32.mrf.mxu1 }
 0x107   :  { %v2540_v14 = vadd.f32 %v2539_v13, %v2538_v10  ;;  %v2519_v15 = vpop.f32.mrf.mxu0 }
 0x108   :  { %v1192_v16 = vadd.f32 %v2518_v12, %v1152_v7  ;;  %v2541_v17 = vpop.f32.mrf.mxu1  ;;  %v2455_v12 = vld [vmem:[%s3690_s4] ss:$0 sm:$0xff] }
 0x109   :  { %v2520_v18 = vpop.f32.mrf.mxu0 }
 0x10a   :  { %v1232_v19 = vadd.f32 %v2540_v14, %v1192_v16  ;;  %v2542_v20 = vpop.f32.mrf.mxu1 }
 0x123   :  { %v2560_v21 = vpop.f32.mrf.mxu0 }
 0x124   :  { %v2582_v22 = vpop.f32.mrf.mxu1 }
 0x125   :  { %v2561_v23 = vpop.f32.mrf.mxu0 }
 0x126   :  { %v2562_v24 = vadd.f32 %v2561_v23, %v2560_v21  ;;  %v2583_v25 = vpop.f32.mrf.mxu1 }
 0x127   :  { %v2584_v26 = vadd.f32 %v2583_v25, %v2582_v22  ;;  %v2563_v27 = vpop.f32.mrf.mxu0 }
 0x128   :  { %v1272_v28 = vadd.f32 %v2562_v24, %v1232_v19  ;;  %v2585_v29 = vpop.f32.mrf.mxu1 }
 0x129   :  { %v2564_v30 = vpop.f32.mrf.mxu0 }
 0x12a   :  { %v2586_v31 = vpop.f32.mrf.mxu1  ;;  %v1312_v32 = vadd.f32 %v2584_v26, %v1272_v28 }
 0x133   :  { %v1351_v33 = vpop.f32.mrf.mxu0 }
 0x134   :  { %v1352_v34 = vadd.f32 %v1351_v33, %v1312_v32 }
 0x135   :  { %v2740_v35 = vpop.f32.mrf.mxu0 }
 0x137   :  { %v1354_v36 = vpop.f32.mrf.mxu0 }
 0x139   :  { %v2741_v37 = vpop.f32.mrf.mxu0 }
 0x144   :  { %v2609_v38 = vpop.f32.mrf.mxu1 }
 0x146   :  { %v2610_v39 = vpop.f32.mrf.mxu1 }
 0x147   :  { %v2611_v40 = vadd.f32 %v2610_v39, %v2609_v38 }
 0x148   :  { %v2612_v41 = vpop.f32.mrf.mxu1 }
 0x149   :  { %v1995_v42 = vadd.f32 %v2611_v40, %v1352_v34 }
 0x14a   :  { %v2613_v43 = vpop.f32.mrf.mxu1 }
 0x153   :  { %v2631_v44 = vpop.f32.mrf.mxu0 }
 0x155   :  { %v2632_v45 = vpop.f32.mrf.mxu0 }
 0x156   :  { %v2633_v61 = vadd.f32 %v2632_v45, %v2631_v44 }
 0x157   :  { %v2634_v46 = vpop.f32.mrf.mxu0 }
 0x158   :  { %v2035_v63 = vadd.f32 %v2633_v61, %v1995_v42 }
 0x159   :  { %v2635_v47 = vpop.f32.mrf.mxu0 }
 0x164   :  { %v2653_v48 = vpop.f32.mrf.mxu1 }
 0x166   :  { %v2654_v49 = vpop.f32.mrf.mxu1 }
 0x167   :  { %v2655_v62 = vadd.f32 %v2654_v49, %v2653_v48 }
 0x168   :  { %v2656_v50 = vpop.f32.mrf.mxu1 }
 0x169   :  { %v2075_v1 = vadd.f32 %v2655_v62, %v2035_v63 }
 0x16a   :  { %v2657_v51 = vpop.f32.mrf.mxu1 }
 0x173   :  { %v2675_v52 = vpop.f32.mrf.mxu0 }
 0x175   :  { %v2676_v53 = vpop.f32.mrf.mxu0 }
 0x176   :  { %v2677_v0 = vadd.f32 %v2676_v53, %v2675_v52 }
 0x177   :  { %v2678_v54 = vpop.f32.mrf.mxu0 }
 0x178   :  { %v2115_v5 = vadd.f32 %v2677_v0, %v2075_v1 }
 0x179   :  { %v2679_v55 = vpop.f32.mrf.mxu0 }
 0x184   :  { %v2697_v57 = vpop.f32.mrf.mxu1 }
 0x186   :  { %v2698_v58 = vpop.f32.mrf.mxu1 }
 0x187   :  { %v2699_v2 = vadd.f32 %v2698_v58, %v2697_v57 }
 0x188   :  { %v2700_v59 = vpop.f32.mrf.mxu1 }
 0x189   :  { %v2155_v8 = vadd.f32 %v2699_v2, %v2115_v5 }
 0x18a   :  { %v2701_v60 = vpop.f32.mrf.mxu1 }
 0x193   :  { %v2719_v3 = vpop.f32.mrf.mxu0 }
 0x194   :  { %v2234_v4 = vpop.f32.mrf.mxu1 }
 0x195   :  { %v2720_v6 = vpop.f32.mrf.mxu0 }
 0x196   :  { %v2752_v7 = vpop.f32.mrf.mxu1  ;;  %v2721_v9 = vadd.f32 %v2720_v6, %v2719_v3 }
 0x197   :  { %v2722_v56 = vpop.f32.mrf.mxu0 }
 0x198   :  { %v2237_v10 = vpop.f32.mrf.mxu1  ;;  %v2195_v11 = vadd.f32 %v2721_v9, %v2155_v8 }
 0x199   :  { %v2723_v13 = vpop.f32.mrf.mxu0 }
 0x19a   :  { %v2753_v14 = vpop.f32.mrf.mxu1  ;;  %v2235_v15 = vadd.f32 %v2234_v4, %v2195_v11 }
 0x19c   :  { %v2247_v16 = vadd.f32 %v2455_v12, %v2235_v15 }
 0x19e   :  { %2248 = vst [vmem:[%s3691_s5] sm:$0xff] %v2247_v16 }

</bundles_post_ra>
